<compile_context>
chip_gen: v7x
topology: tpu7x:2x2x1
jax: 0.10.0
libtpu: 0.0.40
codegen_flags: <defaults>
</compile_context>

<pallas_src>
import jax
import jax.numpy as jnp
from jax.experimental import pallas as pl
from jax.experimental.pallas import tpu as pltpu


def _round_up(x: int, m: int) -> int:
    return ((x + m - 1) // m) * m


def _cdiv(a: int, b: int) -> int:
    return -(-a // b)


def _vmem_capacity_bytes() -> int:
    """Physical VMEM of the local TPU; conservative 64 MiB (v7x) fallback."""
    try:
        return int(pltpu.get_tpu_info().vmem_capacity_bytes)
    except Exception:
        return 64 << 20


def _mlp_branch_kernel(x_ref, w1_ref, b1_ref, w2_ref, b2_ref, w3_ref, b3_ref,
                       o_ref):
    """Fused 3-layer MLP on one batch tile: tanh(tanh(x@W1+b1)@W2+b2)@W3+b3."""
    # x / weights are bf16 MXU operands; accumulation is f32; bias add + tanh
    # stay in f32 (v5e has no bf16 VPU/EUP).
    h1 = jnp.dot(x_ref[...], w1_ref[...], preferred_element_type=jnp.float32)
    h1 = jnp.tanh(h1 + b1_ref[...])                       # tanh -> EUP slot

    h2 = jnp.dot(h1.astype(jnp.bfloat16), w2_ref[...],
                 preferred_element_type=jnp.float32)
    h2 = jnp.tanh(h2 + b2_ref[...])

    y = jnp.dot(h2.astype(jnp.bfloat16), w3_ref[...],
                preferred_element_type=jnp.float32)
    o_ref[...] = (y + b3_ref[...]).astype(o_ref.dtype)


def _plan_tiling(B, S, H_pad, P_pad, vmem_budget_bytes, max_tb):
    """Pick batch tile size + tile count.

    1) Largest tile (multiple of 8, <= max_tb) whose double-buffered working
       set fits the generation-aware VMEM budget.
    2) Rebalance: smallest tile count at that size, then shrink the tile to
       just cover B (cuts padded-row waste, e.g. B=600 -> 2x304, not 2x512).
    3) Guarantee >=2 (even) tiles when B >= 16 so v7x's two TCs stay busy.
    """
    w_bytes = ((S * H_pad + H_pad * H_pad + H_pad * P_pad) * 2   # bf16 weights
               + (2 * H_pad + P_pad) * 4)                        # f32 biases

    def need(t):
        return (2 * t * S * 2            # x tile, double buffered, bf16
                + 2 * t * P_pad * 4      # out tile, double buffered, f32
                + 2 * t * H_pad * 4      # h1 / h2 intermediates, f32
                + 2 * t * H_pad * 2      # bf16 copies of h1/h2 feeding MXU
                + w_bytes)

    tb = min(max_tb, _round_up(B, 8))
    while tb > 8 and need(tb) > vmem_budget_bytes:
        tb //= 2
    tb = max(8, _round_up(tb, 8))

    num_tiles = max(1, _cdiv(B, tb))
    if B >= 16:
        num_tiles = max(num_tiles, 2)        # keep both v7x TCs busy
    if num_tiles > 1 and num_tiles % 2 == 1:
        num_tiles += 1                       # even split balances 2 cores
    tb = max(8, _round_up(_cdiv(B, num_tiles), 8))
    return tb, num_tiles, need(tb)


@jax.jit
def mlp_branch_net_forward(u, params):
    """u: (B, *in_shape, u_d_out) -> (B, p) branch weights."""
    B = u.shape[0]
    # bf16 activation stream: halves the dominant x DMA; == torch u.view(B,-1).
    x = u.reshape(B, -1).astype(jnp.bfloat16)
    S = x.shape[1]

    w1, b1 = params["w1"], params["b1"]
    w2, b2 = params["w2"], params["b2"]
    w3, b3 = params["w3"], params["b3"]
    H = w1.shape[1]
    p = w3.shape[1]

    # Lane-dense hidden/output dims: zero-pad H and p up to multiples of 128.
    # Pure (tiny) weight prep; mathematically a no-op since tanh(0)=0 and the
    # padded W2/W3 rows/columns are zero.
    H_pad = _round_up(H, 128)
    P_pad = _round_up(p, 128)
    if H_pad != H or P_pad != p:
        w1 = jnp.pad(w1, ((0, 0), (0, H_pad - H)))
        b1 = jnp.pad(b1, ((0, 0), (0, H_pad - H)))
        w2 = jnp.pad(w2, ((0, H_pad - H), (0, H_pad - H)))
        b2 = jnp.pad(b2, ((0, 0), (0, H_pad - H)))
        w3 = jnp.pad(w3, ((0, H_pad - H), (0, P_pad - p)))
        b3 = jnp.pad(b3, ((0, 0), (0, P_pad - p)))
    # TODO(synk): S (num_sensors) is left unpadded to avoid an extra full pass
    # over the activation; pad it upstream if num_sensors % 128 hurts MXU K.

    # Generation-aware VMEM budget / tile cap / limit headroom.
    capacity = _vmem_capacity_bytes()
    if capacity >= (96 << 20):           # 128 MiB parts: v5e / v6e
        budget, max_tb, limit_cap = 96 << 20, 2048, 104 << 20
    else:                                # 64 MiB parts: v7x (tightest)
        budget, max_tb, limit_cap = 40 << 20, 512, 48 << 20

    TB, num_tiles, vmem_need = _plan_tiling(B, S, H_pad, P_pad, budget, max_tb)
    B_pad = num_tiles * TB
    if B_pad != B:
        # Tiny pad (< 8*num_tiles rows) fused onto the already-cast bf16 array.
        x = jnp.pad(x, ((0, B_pad - B), (0, 0)))

    const = lambda shape: pl.BlockSpec(shape, lambda i: (0, 0))

    cost = pl.CostEstimate(
        flops=2 * B_pad * (S * H_pad + H_pad * H_pad + H_pad * P_pad),
        transcendentals=2 * B_pad * H_pad,
        bytes_accessed=(B_pad * S * 2                          # bf16 x in
                        + (w1.size + w2.size + w3.size) * 2    # bf16 weights
                        + (b1.size + b2.size + b3.size) * 4    # f32 biases
                        + B_pad * P_pad * 4),                  # f32 output
    )

    out = pl.pallas_call(
        _mlp_branch_kernel,
        out_shape=jax.ShapeDtypeStruct((B_pad, P_pad), jnp.float32),
        grid_spec=pltpu.PrefetchScalarGridSpec(
            num_scalar_prefetch=0,
            grid=(num_tiles,),
            in_specs=[
                pl.BlockSpec((TB, S), lambda i: (i, 0)),   # x: tiled over batch
                const(w1.shape), const(b1.shape),          # weights resident
                const(w2.shape), const(b2.shape),
                const(w3.shape), const(b3.shape),
            ],
            out_specs=pl.BlockSpec((TB, P_pad), lambda i: (i, 0)),
        ),
        compiler_params=pltpu.CompilerParams(
            # "parallel" lets the runtime shard the (>=2, even) batch tiles
            # across v7x's two TensorCores; no-op on single-TC v5e/v6e.
            dimension_semantics=("parallel",),
            vmem_limit_bytes=min(limit_cap,
                                 max(vmem_need + (4 << 20), 32 << 20)),
        ),
        cost_estimate=cost,
    )(x, w1, b1, w2, b2, w3, b3)

    return out[:B, :p]


def init_params(key, num_sensors, hidden, num_branches):
    """Deterministic synthetic parameter init (uniform, like torch Linear)."""
    ks = jax.random.split(key, 6)

    def lin(kw, kb, d_in, d_out):
        bound = 1.0 / jnp.sqrt(d_in)
        w = jax.random.uniform(kw, (d_in, d_out), jnp.float32, -bound, bound)
        b = jax.random.uniform(kb, (1, d_out), jnp.float32, -bound, bound)
        # Weights live in HBM as bf16 (halves weight DMA); biases stay f32.
        return w.astype(jnp.bfloat16), b

    w1, b1 = lin(ks[0], ks[1], num_sensors, hidden)
    w2, b2 = lin(ks[2], ks[3], hidden, hidden)
    w3, b3 = lin(ks[4], ks[5], hidden, num_branches)
    return {"w1": w1, "b1": b1, "w2": w2, "b2": b2, "w3": w3, "b3": b3}


def reference_forward(u, params):
    """Pure-JAX reference mirroring the kernel's bf16-operand / f32-acc math."""
    x = u.reshape(u.shape[0], -1).astype(jnp.bfloat16)
    h1 = jnp.tanh(jnp.dot(x, params["w1"],
                          preferred_element_type=jnp.float32) + params["b1"])
    h2 = jnp.tanh(jnp.dot(h1.astype(jnp.bfloat16), params["w2"],
                          preferred_element_type=jnp.float32) + params["b2"])
    return jnp.dot(h2.astype(jnp.bfloat16), params["w3"],
                   preferred_element_type=jnp.float32) + params["b3"]


if __name__ == "__main__":
    key = jax.random.PRNGKey(0)
    k_u, k_p, k_u2 = jax.random.split(key, 3)

    # Module-consistent small shapes: u = (B, *in_shape, u_d_out) = (2, 4, 4, 1)
    B, in_h, in_w, u_d_out = 2, 4, 4, 1
    num_sensors = in_h * in_w * u_d_out   # 16
    hidden = 32
    num_branches = 8

    u = jax.random.normal(k_u, (B, in_h, in_w, u_d_out), jnp.float32)
    params = init_params(k_p, num_sensors, hidden, num_branches)

    y = jax.block_until_ready(mlp_branch_net_forward(u, params))
    y_ref = reference_forward(u, params)
    assert y.shape == (B, num_branches), y.shape
    assert jnp.allclose(y, y_ref, atol=5e-3, rtol=5e-3), \
        f"max abs err {jnp.max(jnp.abs(y - y_ref))}"

    # Larger batch exercises the rebalanced multi-tile pipelined grid path
    # (B=600 -> 2 tiles of 304 rows, plus hidden/output lane padding).
    B2 = 600
    u2 = jax.random.normal(k_u2, (B2, in_h, in_w, u_d_out), jnp.float32)
    y2 = jax.block_until_ready(mlp_branch_net_forward(u2, params))
    y2_ref = reference_forward(u2, params)
    assert y2.shape == (B2, num_branches), y2.shape
    assert jnp.allclose(y2, y2_ref, atol=5e-3, rtol=5e-3), \
        f"max abs err {jnp.max(jnp.abs(y2 - y2_ref))}"

    print("KERNEL_OK")
</pallas_src>

<mosaic_0001>
module attributes {stable_mosaic.version = 11 : i64} {
  func.func @_mlp_branch_kernel(%arg0: i32, %arg1: memref<8x16xbf16, #tpu.memory_space<vmem>>, %arg2: memref<16x128xbf16, #tpu.memory_space<vmem>>, %arg3: memref<1x128xf32, #tpu.memory_space<vmem>>, %arg4: memref<128x128xbf16, #tpu.memory_space<vmem>>, %arg5: memref<1x128xf32, #tpu.memory_space<vmem>>, %arg6: memref<128x128xbf16, #tpu.memory_space<vmem>>, %arg7: memref<1x128xf32, #tpu.memory_space<vmem>>, %arg8: memref<8x128xf32, #tpu.memory_space<vmem>>) attributes {dimension_semantics = [#tpu.dimension_semantics<parallel>], iteration_bounds = array<i64: 1>, scalar_prefetch = 0 : i64, scratch_operands = 0 : i64, tpu.core_type = #tpu.core_type<tc>, window_params = [{transform_indices = @transform_0, window_bounds = array<i64: 8, 16>}, {pipeline_mode = #tpu.pipeline_mode<synchronous>, transform_indices = @transform_1, window_bounds = array<i64: 16, 128>}, {pipeline_mode = #tpu.pipeline_mode<synchronous>, transform_indices = @transform_2, window_bounds = array<i64: 1, 128>}, {pipeline_mode = #tpu.pipeline_mode<synchronous>, transform_indices = @transform_3, window_bounds = array<i64: 128, 128>}, {pipeline_mode = #tpu.pipeline_mode<synchronous>, transform_indices = @transform_4, window_bounds = array<i64: 1, 128>}, {pipeline_mode = #tpu.pipeline_mode<synchronous>, transform_indices = @transform_5, window_bounds = array<i64: 128, 128>}, {pipeline_mode = #tpu.pipeline_mode<synchronous>, transform_indices = @transform_6, window_bounds = array<i64: 1, 128>}, {transform_indices = @transform_7, window_bounds = array<i64: 8, 128>}]} {
    %c0 = arith.constant 0 : index
    %c0_0 = arith.constant 0 : index
    %0 = vector.load %arg1[%c0, %c0_0] : memref<8x16xbf16, #tpu.memory_space<vmem>>, vector<8x16xbf16>
    %c0_1 = arith.constant 0 : index
    %c0_2 = arith.constant 0 : index
    %1 = vector.load %arg2[%c0_1, %c0_2] : memref<16x128xbf16, #tpu.memory_space<vmem>>, vector<16x128xbf16>
    %cst = arith.constant dense<0.000000e+00> : vector<8x128xf32>
    %2 = tpu.matmul %0, %1, %cst {dimension_numbers = #tpu.dot_dimension_numbers<[1], [0], [0], [1], [0, 0, 1, 1], [], []>} : vector<8x16xbf16>, vector<16x128xbf16>, vector<8x128xf32> -> vector<8x128xf32>
    %c0_3 = arith.constant 0 : index
    %c0_4 = arith.constant 0 : index
    %3 = vector.load %arg3[%c0_3, %c0_4] : memref<1x128xf32, #tpu.memory_space<vmem>>, vector<1x128xf32>
    %4 = vector.broadcast %3 : vector<1x128xf32> to vector<8x128xf32>
    %5 = arith.addf %2, %4 : vector<8x128xf32>
    %6 = math.tanh %5 : vector<8x128xf32>
    %7 = arith.truncf %6 : vector<8x128xf32> to vector<8x128xbf16>
    %c0_5 = arith.constant 0 : index
    %c0_6 = arith.constant 0 : index
    %8 = vector.load %arg4[%c0_5, %c0_6] : memref<128x128xbf16, #tpu.memory_space<vmem>>, vector<128x128xbf16>
    %cst_7 = arith.constant dense<0.000000e+00> : vector<8x128xf32>
    %9 = tpu.matmul %7, %8, %cst_7 {dimension_numbers = #tpu.dot_dimension_numbers<[1], [0], [0], [1], [0, 0, 1, 1], [], []>} : vector<8x128xbf16>, vector<128x128xbf16>, vector<8x128xf32> -> vector<8x128xf32>
    %c0_8 = arith.constant 0 : index
    %c0_9 = arith.constant 0 : index
    %10 = vector.load %arg5[%c0_8, %c0_9] : memref<1x128xf32, #tpu.memory_space<vmem>>, vector<1x128xf32>
    %11 = vector.broadcast %10 : vector<1x128xf32> to vector<8x128xf32>
    %12 = arith.addf %9, %11 : vector<8x128xf32>
    %13 = math.tanh %12 : vector<8x128xf32>
    %14 = arith.truncf %13 : vector<8x128xf32> to vector<8x128xbf16>
    %c0_10 = arith.constant 0 : index
    %c0_11 = arith.constant 0 : index
    %15 = vector.load %arg6[%c0_10, %c0_11] : memref<128x128xbf16, #tpu.memory_space<vmem>>, vector<128x128xbf16>
    %cst_12 = arith.constant dense<0.000000e+00> : vector<8x128xf32>
    %16 = tpu.matmul %14, %15, %cst_12 {dimension_numbers = #tpu.dot_dimension_numbers<[1], [0], [0], [1], [0, 0, 1, 1], [], []>} : vector<8x128xbf16>, vector<128x128xbf16>, vector<8x128xf32> -> vector<8x128xf32>
    %c0_13 = arith.constant 0 : index
    %c0_14 = arith.constant 0 : index
    %17 = vector.load %arg7[%c0_13, %c0_14] : memref<1x128xf32, #tpu.memory_space<vmem>>, vector<1x128xf32>
    %18 = vector.broadcast %17 : vector<1x128xf32> to vector<8x128xf32>
    %19 = arith.addf %16, %18 : vector<8x128xf32>
    %c0_15 = arith.constant 0 : index
    %c0_16 = arith.constant 0 : index
    %20 = vector.load %arg8[%c0_15, %c0_16] : memref<8x128xf32, #tpu.memory_space<vmem>>, vector<8x128xf32>
    tpu.vector_store %arg8[%c0_15, %c0_16], %19 {strides = array<i32>} : memref<8x128xf32, #tpu.memory_space<vmem>>, vector<8x128xf32>,
    return
  }
  func.func @transform_0(%arg0: i32) -> (i32, i32) {
    %c0_i32 = arith.constant 0 : i32
    %c0_i32_0 = arith.constant 0 : i32
    return %arg0, %c0_i32 : i32, i32
  }
  func.func @transform_1(%arg0: i32) -> (i32, i32) {
    %c0_i32 = arith.constant 0 : i32
    %c0_i32_0 = arith.constant 0 : i32
    %c0_i32_1 = arith.constant 0 : i32
    return %c0_i32, %c0_i32_0 : i32, i32
  }
  func.func @transform_2(%arg0: i32) -> (i32, i32) {
    %c0_i32 = arith.constant 0 : i32
    %c0_i32_0 = arith.constant 0 : i32
    %c0_i32_1 = arith.constant 0 : i32
    return %c0_i32, %c0_i32_0 : i32, i32
  }
  func.func @transform_3(%arg0: i32) -> (i32, i32) {
    %c0_i32 = arith.constant 0 : i32
    %c0_i32_0 = arith.constant 0 : i32
    %c0_i32_1 = arith.constant 0 : i32
    return %c0_i32, %c0_i32_0 : i32, i32
  }
  func.func @transform_4(%arg0: i32) -> (i32, i32) {
    %c0_i32 = arith.constant 0 : i32
    %c0_i32_0 = arith.constant 0 : i32
    %c0_i32_1 = arith.constant 0 : i32
    return %c0_i32, %c0_i32_0 : i32, i32
  }
  func.func @transform_5(%arg0: i32) -> (i32, i32) {
    %c0_i32 = arith.constant 0 : i32
    %c0_i32_0 = arith.constant 0 : i32
    %c0_i32_1 = arith.constant 0 : i32
    return %c0_i32, %c0_i32_0 : i32, i32
  }
  func.func @transform_6(%arg0: i32) -> (i32, i32) {
    %c0_i32 = arith.constant 0 : i32
    %c0_i32_0 = arith.constant 0 : i32
    %c0_i32_1 = arith.constant 0 : i32
    return %c0_i32, %c0_i32_0 : i32, i32
  }
  func.func @transform_7(%arg0: i32) -> (i32, i32) {
    %c0_i32 = arith.constant 0 : i32
    %c0_i32_0 = arith.constant 0 : i32
    return %arg0, %c0_i32 : i32, i32
  }
}

</mosaic_0001>

<bundles_post_ra>
// kernel: mlp_branch_net_forward.1
= control target key start
LH: loop header
LB: loop body
LE: loop exit
PB: predicated region body
PF: predicated region fallthrough
CT: control target
= control target key end

     0   :  { %v428_v0 = vmov 0.0   ;;  %vm429_vm0 = vmmov 0   ;;  %vm43_vm1 = vcmask 130048   ;;  %s556_s1 = inlined_call_operand.vmem [shape: bf16[16,128], index: 1, kind: input, shape index: {}]   ;;  %s557_s0 = inlined_call_operand.vmem [shape: bf16[8,16], index: 0, kind: input, shape index: {}]   ;;  %s558_s3 = inlined_call_operand.vmem [shape: bf16[128,128], index: 3, kind: input, shape index: {}]   ;;  %s559_s5 = inlined_call_operand.vmem [shape: bf16[128,128], index: 5, kind: input, shape index: {}]   ;;  %s560_s2 = inlined_call_operand.vmem [shape: f32[1,128], index: 2, kind: input, shape index: {}]   ;;  %s561_s4 = inlined_call_operand.vmem [shape: f32[1,128], index: 4, kind: input, shape index: {}]   ;;  %s562_s6 = inlined_call_operand.vmem [shape: f32[1,128], index: 6, kind: input, shape index: {}]   ;;  %s563_s7 = inlined_call_operand.vmem [shape: f32[8,128], index: 7, kind: output, shape index: {}]  }
   0x1   :  { %359 = vmatprep.subr.bf16.mxu0 %v428_v0  ;;  %v407_v1 = vld [vmem:[%s556_s1] sm:$0xff]   ;;  %361 = vmatprep.mubr.msk.bf16.mxu0 %vm429_vm0, %v428_v0  ;;  %v409_v4 = vld [vmem:[%s558_s3 + $0x8] sm:$0xff]   ;;  %v410_v5 = vld [vmem:[%s558_s3 + $0x10] sm:$0xff]  }
   0x2   :  { %v27_v2 = vld [vmem:[%s557_s0] sm:$0xf]  ;;  %365 = vmatprep.subr.bf16.mxu1 %v428_v0  ;;  %381 = vmatprep.mubr.msk.bf16.mxu1 %vm429_vm0, %v428_v0  ;;  %v411_v6 = vld [vmem:[%s558_s3 + $0x18] sm:$0xff]   ;;  %v413_v8 = vld [vmem:[%s558_s3 + $0x28] sm:$0xff]  }
   0x3   :  { %360 = vmatpush3.bf16.msra.mxu0 %v407_v1  ;;  %v408_v3 = vld [vmem:[%s558_s3] sm:$0xff]   ;;  %v414_v9 = vld [vmem:[%s558_s3 + $0x30] sm:$0xff]   ;;  %v415_v10 = vld [vmem:[%s558_s3 + $0x38] sm:$0xff]  }
   0x4   :  { %385 = vmatprep.subr.bf16.mxu0 %v428_v0  ;;  %366 = vmatpush3.bf16.msra.mxu1 %v408_v3  ;;  %v412_v7 = vld [vmem:[%s558_s3 + $0x20] sm:$0xff]   ;;  %v417_v12 = vld [vmem:[%s559_s5 + $0x8] sm:$0xff]   ;;  %v418_v13 = vld [vmem:[%s559_s5 + $0x10] sm:$0xff]  }
   0x5   :  { %367 = vmatprep.subr.bf16.mxu1 %v428_v0  ;;  %v416_v11 = vld [vmem:[%s559_s5] sm:$0xff]   ;;  %v419_v14 = vld [vmem:[%s559_s5 + $0x18] sm:$0xff]   ;;  %v421_v24 = vld [vmem:[%s559_s5 + $0x28] sm:$0xff]  }
   0x6   :  { %362 = vmatmul.mubr.msk.bf16.vlgmr.msra.gmra.mrb[0].mxu0 %vm43_vm1, %v27_v2  ;;  %v318_v15 = vld [vmem:[%s560_s2] ss:$0 sm:$0xff]  ;;  %v422_v25 = vld [vmem:[%s559_s5 + $0x30] sm:$0xff]   ;;  %v423_v26 = vld [vmem:[%s559_s5 + $0x38] sm:$0xff]  }
   0x7   :  { %401 = vmatprep.mubr.msk.bf16.mxu0 %vm429_vm0, %v428_v0  ;;  %386 = vmatpush3.bf16.msra.mxu0 %v416_v11  ;;  %v420_v23 = vld [vmem:[%s559_s5 + $0x20] sm:$0xff]  }
   0x8   :  { %368 = vmatpush3.bf16.msra.mxu1 %v409_v4  ;;  %387 = vmatprep.subr.bf16.mxu0 %v428_v0  ;;  %v321_v27 = vld [vmem:[%s561_s4] ss:$0 sm:$0xff] }
   0x9   :  { %369 = vmatprep.subr.bf16.mxu1 %v428_v0  ;;  %v330_v35 = vld [vmem:[%s562_s6] ss:$0 sm:$0xff] }
   0xb   :  { %388 = vmatpush3.bf16.msra.mxu0 %v417_v12 }
   0xc   :  { %370 = vmatpush3.bf16.msra.mxu1 %v410_v5  ;;  %389 = vmatprep.subr.bf16.mxu0 %v428_v0 }
   0xd   :  { %371 = vmatprep.subr.bf16.mxu1 %v428_v0 }
   0xf   :  { %390 = vmatpush3.bf16.msra.mxu0 %v418_v13 }
  0x10   :  { %372 = vmatpush3.bf16.msra.mxu1 %v411_v6  ;;  %391 = vmatprep.subr.bf16.mxu0 %v428_v0 }
  0x11   :  { %373 = vmatprep.subr.bf16.mxu1 %v428_v0 }
  0x13   :  { %392 = vmatpush3.bf16.msra.mxu0 %v419_v14 }
  0x14   :  { %374 = vmatpush3.bf16.msra.mxu1 %v412_v7  ;;  %393 = vmatprep.subr.bf16.mxu0 %v428_v0 }
  0x15   :  { %375 = vmatprep.subr.bf16.mxu1 %v428_v0 }
  0x17   :  { %394 = vmatpush3.bf16.msra.mxu0 %v420_v23 }
  0x18   :  { %376 = vmatpush3.bf16.msra.mxu1 %v413_v8  ;;  %395 = vmatprep.subr.bf16.mxu0 %v428_v0 }
  0x19   :  { %377 = vmatprep.subr.bf16.mxu1 %v428_v0 }
  0x1b   :  { %396 = vmatpush3.bf16.msra.mxu0 %v421_v24 }
  0x1c   :  { %378 = vmatpush3.bf16.msra.mxu1 %v414_v9  ;;  %397 = vmatprep.subr.bf16.mxu0 %v428_v0 }
  0x1d   :  { %379 = vmatprep.subr.bf16.mxu1 %v428_v0 }
  0x1f   :  { %398 = vmatpush3.bf16.msra.mxu0 %v422_v25 }
  0x20   :  { %380 = vmatpush3.bf16.msra.mxu1 %v415_v10  ;;  %399 = vmatprep.subr.bf16.mxu0 %v428_v0 }
  0x23   :  { %400 = vmatpush3.bf16.msra.mxu0 %v423_v26 }
  0xd9   :  { %v81_v16 = vpop.f32.mrb[0].mxu0 }
  0xda   :  { %v82_v17 = vadd.f32 %v318_v15, %v81_v16  ;;  %v363_v18 = vpop.f32.mrb[1].mxu0 }
  0xdb   :  { %v84_v19 = vpop.f32.mrb[2].mxu0 }
  0xdc   :  { %424 = vtanh.f32 %v82_v17  ;;  %v364_v20 = vpop.f32.mrb[3].mxu0 }
  0xe6   :  { %v425_v21 = vpop.eup %424 }
  0xe7   :  { %v88_v22 = vpack.c.bf16 %v425_v21, %v425_v21 }
  0xe9   :  { %382 = vmatmul.mubr.bf16.vlgmr.msra.gmra.mrb[0].mxu1 %v88_v22 }
 0x1bc   :  { %v194_v28 = vpop.f32.mrb[0].mxu1 }
 0x1bd   :  { %v195_v29 = vadd.f32 %v321_v27, %v194_v28  ;;  %v383_v30 = vpop.f32.mrb[1].mxu1 }
 0x1be   :  { %v197_v31 = vpop.f32.mrb[2].mxu1 }
 0x1bf   :  { %426 = vtanh.f32 %v195_v29  ;;  %v384_v32 = vpop.f32.mrb[3].mxu1 }
 0x1c9   :  { %v427_v33 = vpop.eup %426 }
 0x1ca   :  { %v201_v34 = vpack.c.bf16 %v427_v33, %v427_v33 }
 0x1cc   :  { %402 = vmatmul.mubr.bf16.vlgmr.msra.gmra.mrb[4].mxu0 %v201_v34 }
 0x29f   :  { %v307_v36 = vpop.f32.mrb[4].mxu0 }
 0x2a0   :  { %v308_v37 = vadd.f32 %v330_v35, %v307_v36  ;;  %v403_v38 = vpop.f32.mrb[5].mxu0 }
 0x2a1   :  { %v310_v39 = vpop.f32.mrb[6].mxu0 }
 0x2a2   :  { %313 = vst [vmem:[%s563_s7] sm:$0xff] %v308_v37  ;;  %v404_v40 = vpop.f32.mrb[7].mxu0 }

</bundles_post_ra>
